<compile_context>
chip_gen: v7x
topology: tpu7x:2x2x1
jax: 0.10.0
libtpu: 0.0.40
codegen_flags: <defaults>
</compile_context>

<pallas_src>
import functools

import jax
import jax.numpy as jnp
from jax import lax
from jax.experimental import pallas as pl
from jax.experimental.pallas import tpu as pltpu


def lstm_classifier_kernel(x_ref, w_ih_ref, w_hh_ref, b_ref,
                           w_fc_ref, b_fc_ref, out_ref, xw_sc,
                           *, num_classes):
    Bp = out_ref.shape[0]                  # padded batch (sublane-aligned, 8)
    T = x_ref.shape[0] // Bp               # timesteps
    H = w_hh_ref.shape[0]                  # true hidden size (32)
    Op = out_ref.shape[1]                  # padded classes (lane-aligned, 128)
    cdt = w_hh_ref.dtype                   # MXU operand dtype (bf16)

    # --- hoisted input projection: one matmul for all timesteps (+ fused f32 bias) ---
    # x_ref: [T*Bp, I] bf16, w_ih: [I, Gp] bf16, b: [1, Gp] f32  ->  [T*Bp, Gp] f32
    xw_sc[...] = (jnp.dot(x_ref[...], w_ih_ref[...],
                          preferred_element_type=jnp.float32)
                  + b_ref[...])

    w_hh = w_hh_ref[...]                   # [H, Gp] bf16 — stays live in vregs

    # --- serial recurrence; h/c carried in vregs; packed-gate nonlinearities ---
    def step(t, carry):
        h, c = carry
        row = pl.multiple_of(t * Bp, Bp)
        xw_t = xw_sc[pl.ds(row, Bp), :]                              # [Bp, Gp] f32
        gates = xw_t + jnp.dot(h.astype(cdt), w_hh,
                               preferred_element_type=jnp.float32)   # [Bp, Gp] f32
        # Whole-vreg EUP passes, then static lane slices (PyTorch gate order i,f,g,o).
        sig = jax.nn.sigmoid(gates)
        tnh = jnp.tanh(gates)
        i_g = sig[:, 0:H]
        f_g = sig[:, H:2 * H]
        g_g = tnh[:, 2 * H:3 * H]
        o_g = sig[:, 3 * H:4 * H]
        c_new = f_g * c + i_g * g_g
        h_new = o_g * jnp.tanh(c_new)
        return h_new, c_new

    h0 = jnp.zeros((Bp, H), jnp.float32)   # PyTorch default h0 = c0 = 0
    c0 = jnp.zeros((Bp, H), jnp.float32)
    h, _ = lax.fori_loop(0, T, step, (h0, c0), unroll=min(T, 8))

    # --- fc on last hidden state + masked, exactly-normalized softmax ---
    logits = (jnp.dot(h.astype(w_fc_ref.dtype), w_fc_ref[...],
                      preferred_element_type=jnp.float32)
              + b_fc_ref[...])                                       # [Bp, Op] f32
    col = lax.broadcasted_iota(jnp.int32, (Bp, Op), 1)
    logits = jnp.where(col < num_classes, logits, -1e30)             # mask padded classes
    m = jnp.max(logits, axis=1, keepdims=True)
    e = jnp.exp(logits - m)
    s = jnp.sum(e, axis=1, keepdims=True)
    out_ref[...] = (e / s).astype(out_ref.dtype)


def lstm_classifier(x, w_ih, w_hh, b_ih, b_hh, w_fc, b_fc, hidden_size):
    """x: [B, T, input_size]; weights in PyTorch layout:
       w_ih [4H, I], w_hh [4H, H], b_ih/b_hh [4H], w_fc [O, H], b_fc [O]."""
    B, T, I = x.shape
    H = hidden_size
    O = w_fc.shape[0]

    LANE, SUB = 128, 8
    G = 4 * H
    Gp = ((G + LANE - 1) // LANE) * LANE          # packed gates, lane padded (128 -> 128)
    Op = ((O + LANE - 1) // LANE) * LANE          # class lane padding (8 -> 128)
    Bp = ((B + SUB - 1) // SUB) * SUB             # batch sublane padding (4 -> 8)

    f32, bf16 = jnp.float32, jnp.bfloat16

    # --- wrapper-side layout plumbing (time-major, padded, right-multiply form) ---
    x_tm = jnp.transpose(x, (1, 0, 2)).astype(f32)                   # [T, B, I]
    x_p = jnp.pad(x_tm, ((0, 0), (0, Bp - B), (0, 0)))               # [T, Bp, I]
    x2d = x_p.reshape(T * Bp, I).astype(bf16)                        # [T*Bp, I]

    # Gates packed contiguously (i,f,g,o) in the lane dim, zero-padded only at the end.
    w_ih_p = jnp.pad(jnp.transpose(w_ih).astype(f32),
                     ((0, 0), (0, Gp - G))).astype(bf16)             # [I, Gp]
    w_hh_p = jnp.pad(jnp.transpose(w_hh).astype(f32),
                     ((0, 0), (0, Gp - G))).astype(bf16)             # [H, Gp]
    b_p = jnp.pad((b_ih + b_hh).astype(f32), (0, Gp - G)).reshape(1, Gp)   # [1, Gp] f32
    w_fc_p = jnp.pad(jnp.transpose(w_fc).astype(f32),
                     ((0, 0), (0, Op - O))).astype(bf16)             # [H, Op]
    b_fc_p = jnp.pad(b_fc.astype(f32), (0, Op - O)).reshape(1, Op)   # [1, Op] f32

    vmem_spec = lambda: pl.BlockSpec(memory_space=pltpu.MemorySpace.VMEM)

    out_p = pl.pallas_call(
        functools.partial(lstm_classifier_kernel, num_classes=O),
        out_shape=jax.ShapeDtypeStruct((Bp, Op), jnp.float32),
        in_specs=[vmem_spec() for _ in range(6)],
        out_specs=vmem_spec(),
        scratch_shapes=[
            pltpu.VMEM((T * Bp, Gp), jnp.float32),   # hoisted x@W_ih + b
        ],
    )(x2d, w_ih_p, w_hh_p, b_p, w_fc_p, b_fc_p)

    return out_p[:B, :O]


def _reference(x, w_ih, w_hh, b_ih, b_hh, w_fc, b_fc, H):
    B, T, I = x.shape
    h = jnp.zeros((B, H), jnp.float32)
    c = jnp.zeros((B, H), jnp.float32)
    for t in range(T):
        g = x[:, t, :] @ w_ih.T + b_ih + h @ w_hh.T + b_hh
        i = jax.nn.sigmoid(g[:, 0:H])
        f = jax.nn.sigmoid(g[:, H:2 * H])
        gg = jnp.tanh(g[:, 2 * H:3 * H])
        o = jax.nn.sigmoid(g[:, 3 * H:4 * H])
        c = f * c + i * gg
        h = o * jnp.tanh(c)
    logits = h @ w_fc.T + b_fc
    return jax.nn.softmax(logits, axis=1)


if __name__ == "__main__":
    B, T, I, H, O = 4, 8, 16, 32, 8

    key = jax.random.PRNGKey(0)
    ks = jax.random.split(key, 7)
    scale = 1.0 / jnp.sqrt(H)   # matches PyTorch uniform(-1/sqrt(H), 1/sqrt(H)) range
    w_ih = jax.random.uniform(ks[0], (4 * H, I), jnp.float32, -scale, scale)
    w_hh = jax.random.uniform(ks[1], (4 * H, H), jnp.float32, -scale, scale)
    b_ih = jax.random.uniform(ks[2], (4 * H,), jnp.float32, -scale, scale)
    b_hh = jax.random.uniform(ks[3], (4 * H,), jnp.float32, -scale, scale)
    w_fc = jax.random.uniform(ks[4], (O, H), jnp.float32, -scale, scale)
    b_fc = jax.random.uniform(ks[5], (O,), jnp.float32, -scale, scale)
    x = jax.random.normal(ks[6], (B, T, I), jnp.float32)

    out = lstm_classifier(x, w_ih, w_hh, b_ih, b_hh, w_fc, b_fc, H)
    out = jax.block_until_ready(out)

    ref = _reference(x, w_ih, w_hh, b_ih, b_hh, w_fc, b_fc, H)
    assert out.shape == (B, O)
    # Tolerance accounts for bf16 MXU operands (f32 accumulation).
    assert jnp.allclose(out, ref, atol=2e-2, rtol=2e-2)
    assert jnp.allclose(jnp.sum(out, axis=1), jnp.ones((B,)), atol=2e-2)

    print("KERNEL_OK")
</pallas_src>

<mosaic_0001>
module attributes {stable_mosaic.version = 11 : i64} {
  func.func @lstm_classifier_kernel(%arg0: memref<64x16xbf16, #tpu.memory_space<vmem>>, %arg1: memref<16x128xbf16, #tpu.memory_space<vmem>>, %arg2: memref<32x128xbf16, #tpu.memory_space<vmem>>, %arg3: memref<1x128xf32, #tpu.memory_space<vmem>>, %arg4: memref<32x128xbf16, #tpu.memory_space<vmem>>, %arg5: memref<1x128xf32, #tpu.memory_space<vmem>>, %arg6: memref<8x128xf32, #tpu.memory_space<vmem>>, %arg7: memref<64x128xf32, #tpu.memory_space<vmem>>) attributes {dimension_semantics = [], scalar_prefetch = 0 : i64, scratch_operands = 1 : i64, tpu.core_type = #tpu.core_type<tc>} {
    %c0 = arith.constant 0 : index
    %c0_0 = arith.constant 0 : index
    %0 = vector.load %arg0[%c0, %c0_0] : memref<64x16xbf16, #tpu.memory_space<vmem>>, vector<64x16xbf16>
    %c0_1 = arith.constant 0 : index
    %c0_2 = arith.constant 0 : index
    %1 = vector.load %arg1[%c0_1, %c0_2] : memref<16x128xbf16, #tpu.memory_space<vmem>>, vector<16x128xbf16>
    %cst = arith.constant dense<0.000000e+00> : vector<64x128xf32>
    %2 = tpu.matmul %0, %1, %cst {dimension_numbers = #tpu.dot_dimension_numbers<[1], [0], [0], [1], [0, 0, 1, 1], [], []>} : vector<64x16xbf16>, vector<16x128xbf16>, vector<64x128xf32> -> vector<64x128xf32>
    %c0_3 = arith.constant 0 : index
    %c0_4 = arith.constant 0 : index
    %3 = vector.load %arg3[%c0_3, %c0_4] : memref<1x128xf32, #tpu.memory_space<vmem>>, vector<1x128xf32>
    %4 = vector.broadcast %3 : vector<1x128xf32> to vector<64x128xf32>
    %5 = arith.addf %2, %4 : vector<64x128xf32>
    %c0_5 = arith.constant 0 : index
    %c0_6 = arith.constant 0 : index
    %6 = vector.load %arg7[%c0_5, %c0_6] : memref<64x128xf32, #tpu.memory_space<vmem>>, vector<64x128xf32>
    tpu.vector_store %arg7[%c0_5, %c0_6], %5 {strides = array<i32>} : memref<64x128xf32, #tpu.memory_space<vmem>>, vector<64x128xf32>,
    %c0_7 = arith.constant 0 : index
    %c0_8 = arith.constant 0 : index
    %7 = vector.load %arg2[%c0_7, %c0_8] : memref<32x128xbf16, #tpu.memory_space<vmem>>, vector<32x128xbf16>
    %cst_9 = arith.constant 0.000000e+00 : f32
    %8 = vector.broadcast %cst_9 : f32 to vector<8x32xf32>
    %cst_10 = arith.constant 0.000000e+00 : f32
    %9 = vector.broadcast %cst_10 : f32 to vector<8x32xf32>
    %c0_i32 = arith.constant 0 : i32
    %c8_i32 = arith.constant 8 : i32
    %10 = arith.muli %c0_i32, %c8_i32 : i32
    %11 = tpu.assume_multiple %10, 8 : i32
    %12 = arith.index_cast %11 : i32 to index
    %c0_11 = arith.constant 0 : index
    %13 = vector.load %arg7[%12, %c0_11] : memref<64x128xf32, #tpu.memory_space<vmem>>, vector<8x128xf32>
    %14 = arith.truncf %8 : vector<8x32xf32> to vector<8x32xbf16>
    %cst_12 = arith.constant dense<0.000000e+00> : vector<8x128xf32>
    %15 = tpu.matmul %14, %7, %cst_12 {dimension_numbers = #tpu.dot_dimension_numbers<[1], [0], [0], [1], [0, 0, 1, 1], [], []>} : vector<8x32xbf16>, vector<32x128xbf16>, vector<8x128xf32> -> vector<8x128xf32>
    %16 = arith.addf %13, %15 : vector<8x128xf32>
    %17 = arith.negf %16 : vector<8x128xf32>
    %18 = math.exp %17 : vector<8x128xf32>
    %cst_13 = arith.constant 1.000000e+00 : f32
    %19 = vector.broadcast %cst_13 : f32 to vector<8x128xf32>
    %20 = arith.addf %19, %18 : vector<8x128xf32>
    %21 = arith.divf %19, %20 : vector<8x128xf32>
    %22 = math.tanh %16 : vector<8x128xf32>
    %23 = vector.extract_strided_slice %21 {offsets = [0, 0], sizes = [8, 32], strides = [1, 1]} : vector<8x128xf32> to vector<8x32xf32>
    %24 = vector.extract_strided_slice %21 {offsets = [0, 32], sizes = [8, 32], strides = [1, 1]} : vector<8x128xf32> to vector<8x32xf32>
    %25 = vector.extract_strided_slice %22 {offsets = [0, 64], sizes = [8, 32], strides = [1, 1]} : vector<8x128xf32> to vector<8x32xf32>
    %26 = vector.extract_strided_slice %21 {offsets = [0, 96], sizes = [8, 32], strides = [1, 1]} : vector<8x128xf32> to vector<8x32xf32>
    %27 = arith.mulf %24, %9 : vector<8x32xf32>
    %28 = arith.mulf %23, %25 : vector<8x32xf32>
    %29 = arith.addf %27, %28 : vector<8x32xf32>
    %30 = math.tanh %29 : vector<8x32xf32>
    %31 = arith.mulf %26, %30 : vector<8x32xf32>
    %c1_i32 = arith.constant 1 : i32
    %c8_i32_14 = arith.constant 8 : i32
    %32 = arith.muli %c1_i32, %c8_i32_14 : i32
    %33 = tpu.assume_multiple %32, 8 : i32
    %34 = arith.index_cast %33 : i32 to index
    %c0_15 = arith.constant 0 : index
    %35 = vector.load %arg7[%34, %c0_15] : memref<64x128xf32, #tpu.memory_space<vmem>>, vector<8x128xf32>
    %36 = arith.truncf %31 : vector<8x32xf32> to vector<8x32xbf16>
    %cst_16 = arith.constant dense<0.000000e+00> : vector<8x128xf32>
    %37 = tpu.matmul %36, %7, %cst_16 {dimension_numbers = #tpu.dot_dimension_numbers<[1], [0], [0], [1], [0, 0, 1, 1], [], []>} : vector<8x32xbf16>, vector<32x128xbf16>, vector<8x128xf32> -> vector<8x128xf32>
    %38 = arith.addf %35, %37 : vector<8x128xf32>
    %39 = arith.negf %38 : vector<8x128xf32>
    %40 = math.exp %39 : vector<8x128xf32>
    %cst_17 = arith.constant 1.000000e+00 : f32
    %41 = vector.broadcast %cst_17 : f32 to vector<8x128xf32>
    %42 = arith.addf %41, %40 : vector<8x128xf32>
    %43 = arith.divf %41, %42 : vector<8x128xf32>
    %44 = math.tanh %38 : vector<8x128xf32>
    %45 = vector.extract_strided_slice %43 {offsets = [0, 0], sizes = [8, 32], strides = [1, 1]} : vector<8x128xf32> to vector<8x32xf32>
    %46 = vector.extract_strided_slice %43 {offsets = [0, 32], sizes = [8, 32], strides = [1, 1]} : vector<8x128xf32> to vector<8x32xf32>
    %47 = vector.extract_strided_slice %44 {offsets = [0, 64], sizes = [8, 32], strides = [1, 1]} : vector<8x128xf32> to vector<8x32xf32>
    %48 = vector.extract_strided_slice %43 {offsets = [0, 96], sizes = [8, 32], strides = [1, 1]} : vector<8x128xf32> to vector<8x32xf32>
    %49 = arith.mulf %46, %29 : vector<8x32xf32>
    %50 = arith.mulf %45, %47 : vector<8x32xf32>
    %51 = arith.addf %49, %50 : vector<8x32xf32>
    %52 = math.tanh %51 : vector<8x32xf32>
    %53 = arith.mulf %48, %52 : vector<8x32xf32>
    %c2_i32 = arith.constant 2 : i32
    %c8_i32_18 = arith.constant 8 : i32
    %54 = arith.muli %c2_i32, %c8_i32_18 : i32
    %55 = tpu.assume_multiple %54, 8 : i32
    %56 = arith.index_cast %55 : i32 to index
    %c0_19 = arith.constant 0 : index
    %57 = vector.load %arg7[%56, %c0_19] : memref<64x128xf32, #tpu.memory_space<vmem>>, vector<8x128xf32>
    %58 = arith.truncf %53 : vector<8x32xf32> to vector<8x32xbf16>
    %cst_20 = arith.constant dense<0.000000e+00> : vector<8x128xf32>
    %59 = tpu.matmul %58, %7, %cst_20 {dimension_numbers = #tpu.dot_dimension_numbers<[1], [0], [0], [1], [0, 0, 1, 1], [], []>} : vector<8x32xbf16>, vector<32x128xbf16>, vector<8x128xf32> -> vector<8x128xf32>
    %60 = arith.addf %57, %59 : vector<8x128xf32>
    %61 = arith.negf %60 : vector<8x128xf32>
    %62 = math.exp %61 : vector<8x128xf32>
    %cst_21 = arith.constant 1.000000e+00 : f32
    %63 = vector.broadcast %cst_21 : f32 to vector<8x128xf32>
    %64 = arith.addf %63, %62 : vector<8x128xf32>
    %65 = arith.divf %63, %64 : vector<8x128xf32>
    %66 = math.tanh %60 : vector<8x128xf32>
    %67 = vector.extract_strided_slice %65 {offsets = [0, 0], sizes = [8, 32], strides = [1, 1]} : vector<8x128xf32> to vector<8x32xf32>
    %68 = vector.extract_strided_slice %65 {offsets = [0, 32], sizes = [8, 32], strides = [1, 1]} : vector<8x128xf32> to vector<8x32xf32>
    %69 = vector.extract_strided_slice %66 {offsets = [0, 64], sizes = [8, 32], strides = [1, 1]} : vector<8x128xf32> to vector<8x32xf32>
    %70 = vector.extract_strided_slice %65 {offsets = [0, 96], sizes = [8, 32], strides = [1, 1]} : vector<8x128xf32> to vector<8x32xf32>
    %71 = arith.mulf %68, %51 : vector<8x32xf32>
    %72 = arith.mulf %67, %69 : vector<8x32xf32>
    %73 = arith.addf %71, %72 : vector<8x32xf32>
    %74 = math.tanh %73 : vector<8x32xf32>
    %75 = arith.mulf %70, %74 : vector<8x32xf32>
    %c3_i32 = arith.constant 3 : i32
    %c8_i32_22 = arith.constant 8 : i32
    %76 = arith.muli %c3_i32, %c8_i32_22 : i32
    %77 = tpu.assume_multiple %76, 8 : i32
    %78 = arith.index_cast %77 : i32 to index
    %c0_23 = arith.constant 0 : index
    %79 = vector.load %arg7[%78, %c0_23] : memref<64x128xf32, #tpu.memory_space<vmem>>, vector<8x128xf32>
    %80 = arith.truncf %75 : vector<8x32xf32> to vector<8x32xbf16>
    %cst_24 = arith.constant dense<0.000000e+00> : vector<8x128xf32>
    %81 = tpu.matmul %80, %7, %cst_24 {dimension_numbers = #tpu.dot_dimension_numbers<[1], [0], [0], [1], [0, 0, 1, 1], [], []>} : vector<8x32xbf16>, vector<32x128xbf16>, vector<8x128xf32> -> vector<8x128xf32>
    %82 = arith.addf %79, %81 : vector<8x128xf32>
    %83 = arith.negf %82 : vector<8x128xf32>
    %84 = math.exp %83 : vector<8x128xf32>
    %cst_25 = arith.constant 1.000000e+00 : f32
    %85 = vector.broadcast %cst_25 : f32 to vector<8x128xf32>
    %86 = arith.addf %85, %84 : vector<8x128xf32>
    %87 = arith.divf %85, %86 : vector<8x128xf32>
    %88 = math.tanh %82 : vector<8x128xf32>
    %89 = vector.extract_strided_slice %87 {offsets = [0, 0], sizes = [8, 32], strides = [1, 1]} : vector<8x128xf32> to vector<8x32xf32>
    %90 = vector.extract_strided_slice %87 {offsets = [0, 32], sizes = [8, 32], strides = [1, 1]} : vector<8x128xf32> to vector<8x32xf32>
    %91 = vector.extract_strided_slice %88 {offsets = [0, 64], sizes = [8, 32], strides = [1, 1]} : vector<8x128xf32> to vector<8x32xf32>
    %92 = vector.extract_strided_slice %87 {offsets = [0, 96], sizes = [8, 32], strides = [1, 1]} : vector<8x128xf32> to vector<8x32xf32>
    %93 = arith.mulf %90, %73 : vector<8x32xf32>
    %94 = arith.mulf %89, %91 : vector<8x32xf32>
    %95 = arith.addf %93, %94 : vector<8x32xf32>
    %96 = math.tanh %95 : vector<8x32xf32>
    %97 = arith.mulf %92, %96 : vector<8x32xf32>
    %c4_i32 = arith.constant 4 : i32
    %c8_i32_26 = arith.constant 8 : i32
    %98 = arith.muli %c4_i32, %c8_i32_26 : i32
    %99 = tpu.assume_multiple %98, 8 : i32
    %100 = arith.index_cast %99 : i32 to index
    %c0_27 = arith.constant 0 : index
    %101 = vector.load %arg7[%100, %c0_27] : memref<64x128xf32, #tpu.memory_space<vmem>>, vector<8x128xf32>
    %102 = arith.truncf %97 : vector<8x32xf32> to vector<8x32xbf16>
    %cst_28 = arith.constant dense<0.000000e+00> : vector<8x128xf32>
    %103 = tpu.matmul %102, %7, %cst_28 {dimension_numbers = #tpu.dot_dimension_numbers<[1], [0], [0], [1], [0, 0, 1, 1], [], []>} : vector<8x32xbf16>, vector<32x128xbf16>, vector<8x128xf32> -> vector<8x128xf32>
    %104 = arith.addf %101, %103 : vector<8x128xf32>
    %105 = arith.negf %104 : vector<8x128xf32>
    %106 = math.exp %105 : vector<8x128xf32>
    %cst_29 = arith.constant 1.000000e+00 : f32
    %107 = vector.broadcast %cst_29 : f32 to vector<8x128xf32>
    %108 = arith.addf %107, %106 : vector<8x128xf32>
    %109 = arith.divf %107, %108 : vector<8x128xf32>
    %110 = math.tanh %104 : vector<8x128xf32>
    %111 = vector.extract_strided_slice %109 {offsets = [0, 0], sizes = [8, 32], strides = [1, 1]} : vector<8x128xf32> to vector<8x32xf32>
    %112 = vector.extract_strided_slice %109 {offsets = [0, 32], sizes = [8, 32], strides = [1, 1]} : vector<8x128xf32> to vector<8x32xf32>
    %113 = vector.extract_strided_slice %110 {offsets = [0, 64], sizes = [8, 32], strides = [1, 1]} : vector<8x128xf32> to vector<8x32xf32>
    %114 = vector.extract_strided_slice %109 {offsets = [0, 96], sizes = [8, 32], strides = [1, 1]} : vector<8x128xf32> to vector<8x32xf32>
    %115 = arith.mulf %112, %95 : vector<8x32xf32>
    %116 = arith.mulf %111, %113 : vector<8x32xf32>
    %117 = arith.addf %115, %116 : vector<8x32xf32>
    %118 = math.tanh %117 : vector<8x32xf32>
    %119 = arith.mulf %114, %118 : vector<8x32xf32>
    %c5_i32 = arith.constant 5 : i32
    %c8_i32_30 = arith.constant 8 : i32
    %120 = arith.muli %c5_i32, %c8_i32_30 : i32
    %121 = tpu.assume_multiple %120, 8 : i32
    %122 = arith.index_cast %121 : i32 to index
    %c0_31 = arith.constant 0 : index
    %123 = vector.load %arg7[%122, %c0_31] : memref<64x128xf32, #tpu.memory_space<vmem>>, vector<8x128xf32>
    %124 = arith.truncf %119 : vector<8x32xf32> to vector<8x32xbf16>
    %cst_32 = arith.constant dense<0.000000e+00> : vector<8x128xf32>
    %125 = tpu.matmul %124, %7, %cst_32 {dimension_numbers = #tpu.dot_dimension_numbers<[1], [0], [0], [1], [0, 0, 1, 1], [], []>} : vector<8x32xbf16>, vector<32x128xbf16>, vector<8x128xf32> -> vector<8x128xf32>
    %126 = arith.addf %123, %125 : vector<8x128xf32>
    %127 = arith.negf %126 : vector<8x128xf32>
    %128 = math.exp %127 : vector<8x128xf32>
    %cst_33 = arith.constant 1.000000e+00 : f32
    %129 = vector.broadcast %cst_33 : f32 to vector<8x128xf32>
    %130 = arith.addf %129, %128 : vector<8x128xf32>
    %131 = arith.divf %129, %130 : vector<8x128xf32>
    %132 = math.tanh %126 : vector<8x128xf32>
    %133 = vector.extract_strided_slice %131 {offsets = [0, 0], sizes = [8, 32], strides = [1, 1]} : vector<8x128xf32> to vector<8x32xf32>
    %134 = vector.extract_strided_slice %131 {offsets = [0, 32], sizes = [8, 32], strides = [1, 1]} : vector<8x128xf32> to vector<8x32xf32>
    %135 = vector.extract_strided_slice %132 {offsets = [0, 64], sizes = [8, 32], strides = [1, 1]} : vector<8x128xf32> to vector<8x32xf32>
    %136 = vector.extract_strided_slice %131 {offsets = [0, 96], sizes = [8, 32], strides = [1, 1]} : vector<8x128xf32> to vector<8x32xf32>
    %137 = arith.mulf %134, %117 : vector<8x32xf32>
    %138 = arith.mulf %133, %135 : vector<8x32xf32>
    %139 = arith.addf %137, %138 : vector<8x32xf32>
    %140 = math.tanh %139 : vector<8x32xf32>
    %141 = arith.mulf %136, %140 : vector<8x32xf32>
    %c6_i32 = arith.constant 6 : i32
    %c8_i32_34 = arith.constant 8 : i32
    %142 = arith.muli %c6_i32, %c8_i32_34 : i32
    %143 = tpu.assume_multiple %142, 8 : i32
    %144 = arith.index_cast %143 : i32 to index
    %c0_35 = arith.constant 0 : index
    %145 = vector.load %arg7[%144, %c0_35] : memref<64x128xf32, #tpu.memory_space<vmem>>, vector<8x128xf32>
    %146 = arith.truncf %141 : vector<8x32xf32> to vector<8x32xbf16>
    %cst_36 = arith.constant dense<0.000000e+00> : vector<8x128xf32>
    %147 = tpu.matmul %146, %7, %cst_36 {dimension_numbers = #tpu.dot_dimension_numbers<[1], [0], [0], [1], [0, 0, 1, 1], [], []>} : vector<8x32xbf16>, vector<32x128xbf16>, vector<8x128xf32> -> vector<8x128xf32>
    %148 = arith.addf %145, %147 : vector<8x128xf32>
    %149 = arith.negf %148 : vector<8x128xf32>
    %150 = math.exp %149 : vector<8x128xf32>
    %cst_37 = arith.constant 1.000000e+00 : f32
    %151 = vector.broadcast %cst_37 : f32 to vector<8x128xf32>
    %152 = arith.addf %151, %150 : vector<8x128xf32>
    %153 = arith.divf %151, %152 : vector<8x128xf32>
    %154 = math.tanh %148 : vector<8x128xf32>
    %155 = vector.extract_strided_slice %153 {offsets = [0, 0], sizes = [8, 32], strides = [1, 1]} : vector<8x128xf32> to vector<8x32xf32>
    %156 = vector.extract_strided_slice %153 {offsets = [0, 32], sizes = [8, 32], strides = [1, 1]} : vector<8x128xf32> to vector<8x32xf32>
    %157 = vector.extract_strided_slice %154 {offsets = [0, 64], sizes = [8, 32], strides = [1, 1]} : vector<8x128xf32> to vector<8x32xf32>
    %158 = vector.extract_strided_slice %153 {offsets = [0, 96], sizes = [8, 32], strides = [1, 1]} : vector<8x128xf32> to vector<8x32xf32>
    %159 = arith.mulf %156, %139 : vector<8x32xf32>
    %160 = arith.mulf %155, %157 : vector<8x32xf32>
    %161 = arith.addf %159, %160 : vector<8x32xf32>
    %162 = math.tanh %161 : vector<8x32xf32>
    %163 = arith.mulf %158, %162 : vector<8x32xf32>
    %c7_i32 = arith.constant 7 : i32
    %c8_i32_38 = arith.constant 8 : i32
    %164 = arith.muli %c7_i32, %c8_i32_38 : i32
    %165 = tpu.assume_multiple %164, 8 : i32
    %166 = arith.index_cast %165 : i32 to index
    %c0_39 = arith.constant 0 : index
    %167 = vector.load %arg7[%166, %c0_39] : memref<64x128xf32, #tpu.memory_space<vmem>>, vector<8x128xf32>
    %168 = arith.truncf %163 : vector<8x32xf32> to vector<8x32xbf16>
    %cst_40 = arith.constant dense<0.000000e+00> : vector<8x128xf32>
    %169 = tpu.matmul %168, %7, %cst_40 {dimension_numbers = #tpu.dot_dimension_numbers<[1], [0], [0], [1], [0, 0, 1, 1], [], []>} : vector<8x32xbf16>, vector<32x128xbf16>, vector<8x128xf32> -> vector<8x128xf32>
    %170 = arith.addf %167, %169 : vector<8x128xf32>
    %171 = arith.negf %170 : vector<8x128xf32>
    %172 = math.exp %171 : vector<8x128xf32>
    %cst_41 = arith.constant 1.000000e+00 : f32
    %173 = vector.broadcast %cst_41 : f32 to vector<8x128xf32>
    %174 = arith.addf %173, %172 : vector<8x128xf32>
    %175 = arith.divf %173, %174 : vector<8x128xf32>
    %176 = math.tanh %170 : vector<8x128xf32>
    %177 = vector.extract_strided_slice %175 {offsets = [0, 0], sizes = [8, 32], strides = [1, 1]} : vector<8x128xf32> to vector<8x32xf32>
    %178 = vector.extract_strided_slice %175 {offsets = [0, 32], sizes = [8, 32], strides = [1, 1]} : vector<8x128xf32> to vector<8x32xf32>
    %179 = vector.extract_strided_slice %176 {offsets = [0, 64], sizes = [8, 32], strides = [1, 1]} : vector<8x128xf32> to vector<8x32xf32>
    %180 = vector.extract_strided_slice %175 {offsets = [0, 96], sizes = [8, 32], strides = [1, 1]} : vector<8x128xf32> to vector<8x32xf32>
    %181 = arith.mulf %178, %161 : vector<8x32xf32>
    %182 = arith.mulf %177, %179 : vector<8x32xf32>
    %183 = arith.addf %181, %182 : vector<8x32xf32>
    %184 = math.tanh %183 : vector<8x32xf32>
    %185 = arith.mulf %180, %184 : vector<8x32xf32>
    %c8_i32_42 = arith.constant 8 : i32
    %186 = arith.truncf %185 : vector<8x32xf32> to vector<8x32xbf16>
    %c0_43 = arith.constant 0 : index
    %c0_44 = arith.constant 0 : index
    %187 = vector.load %arg4[%c0_43, %c0_44] : memref<32x128xbf16, #tpu.memory_space<vmem>>, vector<32x128xbf16>
    %cst_45 = arith.constant dense<0.000000e+00> : vector<8x128xf32>
    %188 = tpu.matmul %186, %187, %cst_45 {dimension_numbers = #tpu.dot_dimension_numbers<[1], [0], [0], [1], [0, 0, 1, 1], [], []>} : vector<8x32xbf16>, vector<32x128xbf16>, vector<8x128xf32> -> vector<8x128xf32>
    %c0_46 = arith.constant 0 : index
    %c0_47 = arith.constant 0 : index
    %189 = vector.load %arg5[%c0_46, %c0_47] : memref<1x128xf32, #tpu.memory_space<vmem>>, vector<1x128xf32>
    %190 = vector.broadcast %189 : vector<1x128xf32> to vector<8x128xf32>
    %191 = arith.addf %188, %190 : vector<8x128xf32>
    %192 = tpu.iota {dimensions = array<i32: 1>} : vector<8x128xi32>
    %c8_i32_48 = arith.constant 8 : i32
    %193 = vector.broadcast %c8_i32_48 : i32 to vector<8x128xi32>
    %194 = arith.cmpi slt, %192, %193 : vector<8x128xi32>
    %cst_49 = arith.constant -1.000000e+30 : f32
    %195 = vector.broadcast %cst_49 : f32 to vector<8x128xf32>
    %196 = arith.select %194, %191, %195 : vector<8x128xi1>, vector<8x128xf32>
    %cst_50 = arith.constant dense<0xFF800000> : vector<8xf32>
    %197 = vector.multi_reduction <maximumf>, %196, %cst_50 [1] : vector<8x128xf32> to vector<8xf32>
    %198 = vector.shape_cast %197 : vector<8xf32> to vector<8x1xf32>
    %199 = vector.broadcast %198 : vector<8x1xf32> to vector<8x128xf32>
    %200 = arith.subf %196, %199 : vector<8x128xf32>
    %201 = math.exp %200 : vector<8x128xf32>
    %cst_51 = arith.constant dense<0.000000e+00> : vector<8xf32>
    %202 = vector.multi_reduction <add>, %201, %cst_51 [1] : vector<8x128xf32> to vector<8xf32>
    %203 = vector.shape_cast %202 : vector<8xf32> to vector<8x1xf32>
    %204 = vector.broadcast %203 : vector<8x1xf32> to vector<8x128xf32>
    %205 = arith.divf %201, %204 : vector<8x128xf32>
    %c0_52 = arith.constant 0 : index
    %c0_53 = arith.constant 0 : index
    %206 = vector.load %arg6[%c0_52, %c0_53] : memref<8x128xf32, #tpu.memory_space<vmem>>, vector<8x128xf32>
    tpu.vector_store %arg6[%c0_52, %c0_53], %205 {strides = array<i32>} : memref<8x128xf32, #tpu.memory_space<vmem>>, vector<8x128xf32>,
    return
  }
}

</mosaic_0001>

<bundles_post_ra>
// kernel: tpu_custom_call.1
= control target key start
LH: loop header
LB: loop body
LE: loop exit
PB: predicated region body
PF: predicated region fallthrough
CT: control target
= control target key end

     0   :  { %v1108_v1 = vmov 0.0   ;;  %vm68_vm0 = vcmask 130048   ;;  %vm1109_vm1 = vmmov 0   ;;  %s1322_s0 = inlined_call_operand.vmem [shape: bf16[64,16], index: 0, kind: input, shape index: {}]   ;;  %s1323_s1 = inlined_call_operand.vmem [shape: bf16[16,128], index: 1, kind: input, shape index: {}]   ;;  %s1324_s2 = inlined_call_operand.vmem [shape: bf16[32,128], index: 2, kind: input, shape index: {}]   ;;  %s1325_s3 = inlined_call_operand.vmem [shape: f32[1,128], index: 3, kind: input, shape index: {}]   ;;  %s1326_s4 = inlined_call_operand.vmem [shape: bf16[32,128], index: 4, kind: input, shape index: {}]   ;;  %s1327_s5 = inlined_call_operand.vmem [shape: f32[1,128], index: 5, kind: input, shape index: {}]   ;;  %s1328_s6 = inlined_call_operand.hbm [shape: f32[8,128], index: 6, kind: output, shape index: {}]  }
   0x1   :  { %v1007_v0 = vld [vmem:[%s1323_s1] sm:$0xff]   ;;  %929 = vmatprep.subr.bf16.mxu1 %v1108_v1  ;;  %v1010_v4 = vld [vmem:[%s1322_s0 + $0x8] sm:$0xff]   ;;  %933 = vmatprep.mubr.msk.bf16.mxu1 %vm1109_vm1, %v1108_v1 }
   0x2   :  { %v1156_v2 = vld [vmem:[%s1324_s2] sm:$0xff]   ;;  %919 = vmatprep.subr.bf16.mxu0 %v1007_v0  ;;  %v1170_v5 = vld [vmem:[%s1324_s2 + $0x8] sm:$0xff]  }
   0x3   :  { %v1009_v3 = vld [vmem:[%s1322_s0] sm:$0xff]   ;;  %930 = vmatpush3.bf16.msra.mxu1 %v1156_v2  ;;  %920 = vmatpush3.bf16.msra.mxu0 %v1007_v0 }
   0x4   :  { %921 = vmatprep.mubr.msk.bf16.mxu0 %vm68_vm0, %v1009_v3  ;;  %931 = vmatprep.subr.bf16.mxu1 %v1108_v1 }
   0x5   :  { %945 = vmatprep.subr.bf16.mxu0 %v1108_v1 }
   0x6   :  { %922 = vmatmul.mubr.msk.bf16.vlgmr.msra.gmra.mrb[0].mxu0 %vm68_vm0, %v1010_v4 }
   0x7   :  { %932 = vmatpush3.bf16.msra.mxu1 %v1170_v5  ;;  %946 = vmatpush3.bf16.msra.mxu0 %v1156_v2 }
   0x8   :  { %11 = vsyncpa [#allocation4], 0  ;;  %937 = vmatprep.subr.bf16.mxu1 %v1108_v1  ;;  %947 = vmatprep.subr.bf16.mxu0 %v1108_v1  ;;  %v1110_v6 = vmov 0   ;;  %v1191_v7 = vld [vmem:[%s1325_s3] ss:$0 sm:$0xff]  ;;  %s1111_s7 = smov 64  }
   0x9   :  { %s1112_s3 = smov 32   ;;  %vm171_vm2 = vcmask 261120   ;;  %v1012_v49 = vld [vmem:[%s1322_s0 + $0x10] sm:$0xff]   ;;  %v1013_v50 = vld [vmem:[%s1322_s0 + $0x18] sm:$0xff]  }
   0xa   :  { %934 = vmatmul.mubr.bf16.vlgmr.msra.gmra.mrb[0].mxu1 %v1110_v6  ;;  %925 = vmatprep.mubr.msk.bf16.mxu0 %vm68_vm0, %v1012_v49 }
   0xb   :  { %938 = vmatpush3.bf16.msra.mxu1 %v1156_v2  ;;  %941 = vmatprep.mubr.msk.bf16.mxu1 %vm1109_vm1, %v1108_v1 }
   0xc   :  { %939 = vmatprep.subr.bf16.mxu1 %v1108_v1  ;;  %948 = vmatpush3.bf16.msra.mxu0 %v1170_v5 }
   0xd   :  { %961 = vmatprep.subr.bf16.mxu0 %v1108_v1 }
   0xe   :  { %926 = vmatmul.mubr.msk.bf16.gmra.mrb[4].mxu0 %vm68_vm0, %v1013_v50 }
   0xf   :  { %940 = vmatpush3.bf16.msra.mxu1 %v1170_v5  ;;  %949 = vmatprep.mubr.msk.bf16.mxu0 %vm1109_vm1, %v1108_v1 }
  0x10   :  { %953 = vmatprep.subr.bf16.mxu1 %v1108_v1 }
  0xd9   :  { %v1193_v8 = vpop.f32.mrb[0].mxu0 }
  0xda   :  { %v115_v9 = vpop.f32.mrb[1].mxu0  ;;  %v124_v60 = vadd.f32 %v1193_v8, %v1191_v7 }
  0xdb   :  { %v116_v10 = vadd.f32 %v1191_v7, %v115_v9  ;;  %v1196_v11 = vpop.f32.mrb[2].mxu0 }
  0xdc   :  { %v118_v12 = vpop.f32.mrb[3].mxu0 }
  0xdd   :  { %v209_v13 = vpop.f32.mrb[0].mxu1  ;;  %v119_v33 = vadd.f32 %v1191_v7, %v118_v12 }
  0xde   :  { %v215_v14 = vadd.f32 %v209_v13, %v116_v10  ;;  %v935_v15 = vpop.f32.mrb[1].mxu1 }
  0xdf   :  { %v212_v16 = vpop.f32.mrb[2].mxu1 }
  0xe0   :  { %1016 = vtanh.f32 %v215_v14  ;;  %v936_v17 = vpop.f32.mrb[3].mxu1  ;;  %v868_v19 = vmul.f32 -1.442695, %v215_v14 }
  0xe1   :  { %v1224_v55 = vpop.f32.mrb[4].mxu0 }
  0xe2   :  { %1018 = vpow2.f32 %v868_v19  ;;  %v1226_v56 = vpop.f32.mrb[5].mxu0 }
  0xe3   :  { %v1228_v57 = vpop.f32.mrb[6].mxu0 }
  0xe4   :  { %v1230_v58 = vpop.f32.mrb[7].mxu0 }
  0xea   :  { %v1017_v18 = vpop.eup %1016 }
  0xeb   :  { %225 = vrot.lane.b32.xlu0 %v1017_v18, %s1111_s7 }
  0xec   :  { %v1019_v20 = vpop.eup %1018 }
  0xed   :  { %v219_v21 = vadd.f32 1.0, %v1019_v20 }
  0xef   :  { %1020 = vrcp.f32 %v219_v21 }
  0xf9   :  { %v1021_v22 = vpop.eup %1020 }
  0xfa   :  { %v223_v25 = vmul.f32 0.0, %v1021_v22 }
 0x15d   :  { %v226_v23 = vpop.permute.xlu0 %225 }
 0x15e   :  { %v228_v24 = vmul.f32 %v1021_v22, %v226_v23 }
 0x160   :  { %230 = vrot.lane.b32.xlu0 %v228_v24, %s1112_s3 }
 0x1d2   :  { %v231_v26 = vpop.permute.xlu0 %230 }
 0x1d3   :  { %v233_v27 = vadd.f32 %v231_v26, %v223_v25 }
 0x1d5   :  { %1022 = vtanh.f32 %v233_v27 }
 0x1df   :  { %v1023_v28 = vpop.eup %1022 }
 0x1e0   :  { %236 = vrot.lane.b32.xlu1 %v1023_v28, %s1111_s7 }
 0x252   :  { %v237_v29 = vpop.permute.xlu1 %236 }
 0x253   :  { %v239_v30 = vmul.f32 %v1021_v22, %v237_v29  ;;  %v127_v22 = vadd.f32 %v1196_v11, %v1191_v7 }
 0x255   :  { %v242_v31 = vpack.c.bf16 %v239_v30, %v239_v30 }
 0x257   :  { %244 = vrot.lane.b32.xlu1 %v242_v31, %s1112_s3 }
 0x2c9   :  { %v245_v32 = vpop.permute.xlu1 %244 }
 0x2ca   :  { %942 = vmatmul.mubr.msk.bf16.vlgmr.msra.gmra.mrb[4].mxu1 %vm171_vm2, %v245_v32 }
 0x2cb   :  { %954 = vmatpush3.bf16.msra.mxu1 %v1156_v2  ;;  %957 = vmatprep.mubr.msk.bf16.mxu1 %vm1109_vm1, %v1108_v1 }
 0x2cc   :  { %955 = vmatprep.subr.bf16.mxu1 %v1108_v1 }
 0x2cf   :  { %956 = vmatpush3.bf16.msra.mxu1 %v1170_v5 }
 0x2d0   :  { %969 = vmatprep.subr.bf16.mxu1 %v1108_v1 }
 0x39d   :  { %v283_v34 = vpop.f32.mrb[4].mxu1 }
 0x39e   :  { %v289_v35 = vadd.f32 %v283_v34, %v119_v33  ;;  %v943_v36 = vpop.f32.mrb[5].mxu1 }
 0x39f   :  { %v286_v37 = vpop.f32.mrb[6].mxu1 }
 0x3a0   :  { %1024 = vtanh.f32 %v289_v35  ;;  %v944_v38 = vpop.f32.mrb[7].mxu1  ;;  %v870_v40 = vmul.f32 -1.442695, %v289_v35 }
 0x3a2   :  { %1026 = vpow2.f32 %v870_v40 }
 0x3aa   :  { %v1025_v39 = vpop.eup %1024 }
 0x3ab   :  { %299 = vrot.lane.b32.xlu0 %v1025_v39, %s1111_s7 }
 0x3ac   :  { %v1027_v41 = vpop.eup %1026 }
 0x3ad   :  { %v293_v42 = vadd.f32 1.0, %v1027_v41 }
 0x3af   :  { %1028 = vrcp.f32 %v293_v42  ;;  %v132_v42 = vadd.f32 %v1191_v7, %v1226_v56 }
 0x3b9   :  { %v1029_v43 = vpop.eup %1028 }
 0x3ba   :  { %v297_v46 = vmul.f32 %v1029_v43, %v233_v27 }
 0x41d   :  { %v300_v44 = vpop.permute.xlu0 %299 }
 0x41e   :  { %v302_v45 = vmul.f32 %v1029_v43, %v300_v44 }
 0x420   :  { %304 = vrot.lane.b32.xlu1 %v302_v45, %s1112_s3 }
 0x492   :  { %v305_v47 = vpop.permute.xlu1 %304 }
 0x493   :  { %v307_v48 = vadd.f32 %v305_v47, %v297_v46 }
 0x495   :  { %1030 = vtanh.f32 %v307_v48 }
 0x49f   :  { %v1031_v51 = vpop.eup %1030 }
 0x4a0   :  { %310 = vrot.lane.b32.xlu0 %v1031_v51, %s1111_s7 }
 0x512   :  { %v311_v52 = vpop.permute.xlu0 %310 }
 0x513   :  { %v313_v53 = vmul.f32 %v1029_v43, %v311_v52 }
 0x515   :  { %v316_v54 = vpack.c.bf16 %v313_v53, %v313_v53 }
 0x517   :  { %318 = vrot.lane.b32.xlu1 %v316_v54, %s1112_s3 }
 0x589   :  { %v319_v59 = vpop.permute.xlu1 %318 }
 0x58a   :  { %950 = vmatmul.mubr.msk.bf16.vlgmr.msra.gmra.mrb[8].mxu0 %vm171_vm2, %v319_v59 }
 0x58b   :  { %962 = vmatpush3.bf16.msra.mxu0 %v1156_v2  ;;  %965 = vmatprep.mubr.msk.bf16.mxu0 %vm1109_vm1, %v1108_v1 }
 0x58c   :  { %963 = vmatprep.subr.bf16.mxu0 %v1108_v1 }
 0x58f   :  { %964 = vmatpush3.bf16.msra.mxu0 %v1170_v5 }
 0x590   :  { %977 = vmatprep.subr.bf16.mxu0 %v1108_v1 }
 0x65d   :  { %v357_v61 = vpop.f32.mrb[8].mxu0 }
 0x65e   :  { %v363_v62 = vadd.f32 %v357_v61, %v124_v60  ;;  %v951_v63 = vpop.f32.mrb[9].mxu0 }
 0x65f   :  { %v360_v0 = vpop.f32.mrb[10].mxu0 }
 0x660   :  { %1032 = vtanh.f32 %v363_v62  ;;  %v952_v3 = vpop.f32.mrb[11].mxu0  ;;  %v872_v6 = vmul.f32 -1.442695, %v363_v62 }
 0x662   :  { %1034 = vpow2.f32 %v872_v6 }
 0x66a   :  { %v1033_v4 = vpop.eup %1032 }
 0x66b   :  { %373 = vrot.lane.b32.xlu0 %v1033_v4, %s1111_s7  ;;  %v135_v4 = vadd.f32 %v1191_v7, %v1230_v58 }
 0x66c   :  { %v1035_v9 = vpop.eup %1034 }
 0x66d   :  { %v367_v10 = vadd.f32 1.0, %v1035_v9 }
 0x66f   :  { %1036 = vrcp.f32 %v367_v10 }
 0x679   :  { %v1037_v12 = vpop.eup %1036 }
 0x67a   :  { %v371_v8 = vmul.f32 %v1037_v12, %v307_v48 }
 0x6dd   :  { %v374_v13 = vpop.permute.xlu0 %373 }
 0x6de   :  { %v376_v14 = vmul.f32 %v1037_v12, %v374_v13 }
 0x6e0   :  { %378 = vrot.lane.b32.xlu1 %v376_v14, %s1112_s3 }
 0x752   :  { %v379_v15 = vpop.permute.xlu1 %378 }
 0x753   :  { %v381_v16 = vadd.f32 %v379_v15, %v371_v8 }
 0x755   :  { %1038 = vtanh.f32 %v381_v16 }
 0x75f   :  { %v1039_v17 = vpop.eup %1038 }
 0x760   :  { %384 = vrot.lane.b32.xlu0 %v1039_v17, %s1111_s7 }
 0x7d2   :  { %v385_v18 = vpop.permute.xlu0 %384 }
 0x7d3   :  { %v387_v19 = vmul.f32 %v1037_v12, %v385_v18 }
 0x7d5   :  { %v390_v20 = vpack.c.bf16 %v387_v19, %v387_v19 }
 0x7d7   :  { %392 = vrot.lane.b32.xlu1 %v390_v20, %s1112_s3 }
 0x849   :  { %v393_v21 = vpop.permute.xlu1 %392 }
 0x84a   :  { %958 = vmatmul.mubr.msk.bf16.vlgmr.msra.gmra.mrb[8].mxu1 %vm171_vm2, %v393_v21 }
 0x84b   :  { %970 = vmatpush3.bf16.msra.mxu1 %v1156_v2  ;;  %973 = vmatprep.mubr.msk.bf16.mxu1 %vm1109_vm1, %v1108_v1 }
 0x84c   :  { %971 = vmatprep.subr.bf16.mxu1 %v1108_v1 }
 0x84f   :  { %972 = vmatpush3.bf16.msra.mxu1 %v1170_v5 }
 0x850   :  { %985 = vmatprep.subr.bf16.mxu1 %v1108_v1 }
 0x91d   :  { %v431_v23 = vpop.f32.mrb[8].mxu1 }
 0x91e   :  { %v437_v24 = vadd.f32 %v431_v23, %v127_v22  ;;  %v959_v25 = vpop.f32.mrb[9].mxu1 }
 0x91f   :  { %v434_v26 = vpop.f32.mrb[10].mxu1  ;;  %v140_v25 = vadd.f32 %v1224_v55, %v1191_v7 }
 0x920   :  { %1040 = vtanh.f32 %v437_v24  ;;  %v960_v27 = vpop.f32.mrb[11].mxu1  ;;  %v874_v29 = vmul.f32 -1.442695, %v437_v24 }
 0x922   :  { %1042 = vpow2.f32 %v874_v29 }
 0x92a   :  { %v1041_v28 = vpop.eup %1040 }
 0x92b   :  { %447 = vrot.lane.b32.xlu0 %v1041_v28, %s1111_s7 }
 0x92c   :  { %v1043_v30 = vpop.eup %1042 }
 0x92d   :  { %v441_v31 = vadd.f32 1.0, %v1043_v30 }
 0x92f   :  { %1044 = vrcp.f32 %v441_v31 }
 0x939   :  { %v1045_v32 = vpop.eup %1044 }
 0x93a   :  { %v445_v11 = vmul.f32 %v1045_v32, %v381_v16 }
 0x99d   :  { %v448_v33 = vpop.permute.xlu0 %447 }
 0x99e   :  { %v450_v34 = vmul.f32 %v1045_v32, %v448_v33 }
 0x9a0   :  { %452 = vrot.lane.b32.xlu1 %v450_v34, %s1112_s3 }
 0xa12   :  { %v453_v35 = vpop.permute.xlu1 %452 }
 0xa13   :  { %v455_v36 = vadd.f32 %v453_v35, %v445_v11 }
 0xa15   :  { %1046 = vtanh.f32 %v455_v36 }
 0xa1f   :  { %v1047_v37 = vpop.eup %1046 }
 0xa20   :  { %458 = vrot.lane.b32.xlu0 %v1047_v37, %s1111_s7 }
 0xa92   :  { %v459_v38 = vpop.permute.xlu0 %458 }
 0xa93   :  { %v461_v39 = vmul.f32 %v1045_v32, %v459_v38 }
 0xa95   :  { %v464_v40 = vpack.c.bf16 %v461_v39, %v461_v39 }
 0xa97   :  { %466 = vrot.lane.b32.xlu1 %v464_v40, %s1112_s3 }
 0xb09   :  { %v467_v41 = vpop.permute.xlu1 %466 }
 0xb0a   :  { %966 = vmatmul.mubr.msk.bf16.vlgmr.msra.gmra.mrb[12].mxu0 %vm171_vm2, %v467_v41 }
 0xb0b   :  { %978 = vmatpush3.bf16.msra.mxu0 %v1156_v2  ;;  %981 = vmatprep.mubr.msk.bf16.mxu0 %vm1109_vm1, %v1108_v1 }
 0xb0c   :  { %979 = vmatprep.subr.bf16.mxu0 %v1108_v1 }
 0xb0f   :  { %980 = vmatpush3.bf16.msra.mxu0 %v1170_v5 }
 0xb10   :  { %993 = vmatprep.subr.bf16.mxu0 %v1108_v1 }
 0xbdd   :  { %v505_v43 = vpop.f32.mrb[12].mxu0 }
 0xbde   :  { %v511_v44 = vadd.f32 %v505_v43, %v132_v42  ;;  %v967_v45 = vpop.f32.mrb[13].mxu0 }
 0xbdf   :  { %v508_v46 = vpop.f32.mrb[14].mxu0 }
 0xbe0   :  { %1048 = vtanh.f32 %v511_v44  ;;  %v968_v47 = vpop.f32.mrb[15].mxu0  ;;  %v876_v49 = vmul.f32 -1.442695, %v511_v44  ;;  %v143_v44 = vadd.f32 %v1228_v57, %v1191_v7 }
 0xbe2   :  { %1050 = vpow2.f32 %v876_v49 }
 0xbea   :  { %v1049_v48 = vpop.eup %1048 }
 0xbeb   :  { %521 = vrot.lane.b32.xlu0 %v1049_v48, %s1111_s7 }
 0xbec   :  { %v1051_v50 = vpop.eup %1050 }
 0xbed   :  { %v515_v51 = vadd.f32 1.0, %v1051_v50 }
 0xbef   :  { %1052 = vrcp.f32 %v515_v51 }
 0xbf9   :  { %v1053_v52 = vpop.eup %1052 }
 0xbfa   :  { %v519_v56 = vmul.f32 %v1053_v52, %v455_v36 }
 0xc5d   :  { %v522_v53 = vpop.permute.xlu0 %521 }
 0xc5e   :  { %v524_v54 = vmul.f32 %v1053_v52, %v522_v53 }
 0xc60   :  { %526 = vrot.lane.b32.xlu1 %v524_v54, %s1112_s3 }
 0xcd2   :  { %v527_v59 = vpop.permute.xlu1 %526 }
 0xcd3   :  { %v529_v60 = vadd.f32 %v527_v59, %v519_v56 }
 0xcd5   :  { %1054 = vtanh.f32 %v529_v60 }
 0xcdf   :  { %v1055_v61 = vpop.eup %1054 }
 0xce0   :  { %532 = vrot.lane.b32.xlu0 %v1055_v61, %s1111_s7  ;;  %v1014_v61 = vld [vmem:[%s1326_s4] sm:$0xff]  }
 0xd52   :  { %v533_v62 = vpop.permute.xlu0 %532 }
 0xd53   :  { %v535_v63 = vmul.f32 %v1053_v52, %v533_v62  ;;  %v1015_v62 = vld [vmem:[%s1326_s4 + $0x8] sm:$0xff]   ;;  %s1113_s4 = smov [#allocation3]  }
 0xd54   :  { %s848_s17 = sshll.u32 %s1113_s4, 4  ;;  %s849_s17 = int_to_ptr.vmem [resolvable:$true] %s848_s17 }
 0xd55   :  { %v538_v0 = vpack.c.bf16 %v535_v63, %v535_v63  ;;  %p1089_p1 = scmp.lt.s32.totalorder %s849_s17, %s849_s17 }
 0xd57   :  { %540 = vrot.lane.b32.xlu1 %v538_v0, %s1112_s3 }
 0xdc9   :  { %v541_v3 = vpop.permute.xlu1 %540 }
 0xdca   :  { %974 = vmatmul.mubr.msk.bf16.vlgmr.msra.gmra.mrb[12].mxu1 %vm171_vm2, %v541_v3 }
 0xdcb   :  { %986 = vmatpush3.bf16.msra.mxu1 %v1156_v2  ;;  %989 = vmatprep.mubr.msk.bf16.mxu1 %vm1109_vm1, %v1108_v1 }
 0xdcc   :  { %987 = vmatprep.subr.bf16.mxu1 %v1108_v1 }
 0xdcf   :  { %988 = vmatpush3.bf16.msra.mxu1 %v1170_v5 }
 0xe9d   :  { %v579_v6 = vpop.f32.mrb[12].mxu1 }
 0xe9e   :  { %v585_v9 = vadd.f32 %v579_v6, %v135_v4  ;;  %v975_v10 = vpop.f32.mrb[13].mxu1 }
 0xe9f   :  { %v582_v12 = vpop.f32.mrb[14].mxu1 }
 0xea0   :  { %1056 = vtanh.f32 %v585_v9  ;;  %v976_v13 = vpop.f32.mrb[15].mxu1  ;;  %v878_v2 = vmul.f32 -1.442695, %v585_v9  ;;  %v828_v9 = vlaneseq  ;;  %v883_v12 = vld [vmem:[%s1327_s5] ss:$0 sm:$0xff]  ;;  %s1084_s5 = scalar_lea.vmem %s849_s17, 128 }
 0xea1   :  { %p1085_p0 = scmp.ne.s32.totalorder %s849_s17, %s1084_s5  ;;  %p1090_p2 = scmp.lt.s32.totalorder %s1084_s5, %s1084_s5 }
 0xea2   :  { %1058 = vpow2.f32 %v878_v2  ;;  %v829_v10 = vand.u32 127, %v828_v9 }
 0xea3   :  { %p1091_p3 = por %p1090_p2, %p1089_p1 }
 0xea4   :  { %vm830_vm3 = vcmp.lt.s32.totalorder %v829_v10, 8 }
 0xea5   :  { %p1092_p4 = pnand %p1091_p3, %p1085_p0 }
 0xeaa   :  { %v1057_v14 = vpop.eup %1056 }
 0xeab   :  { %595 = vrot.lane.b32.xlu0 %v1057_v14, %s1111_s7 }
 0xeac   :  { %v1059_v8 = vpop.eup %1058 }
 0xead   :  { %v589_v15 = vadd.f32 1.0, %v1059_v8 }
 0xeaf   :  { %1060 = vrcp.f32 %v589_v15 }
 0xeb9   :  { %v1061_v16 = vpop.eup %1060 }
 0xeba   :  { %v593_v58 = vmul.f32 %v1061_v16, %v529_v60 }
 0xf1d   :  { %v596_v17 = vpop.permute.xlu0 %595 }
 0xf1e   :  { %v598_v5 = vmul.f32 %v1061_v16, %v596_v17 }
 0xf20   :  { %600 = vrot.lane.b32.xlu1 %v598_v5, %s1112_s3 }
 0xf92   :  { %v601_v18 = vpop.permute.xlu1 %600 }
 0xf93   :  { %v603_v19 = vadd.f32 %v601_v18, %v593_v58 }
 0xf95   :  { %1062 = vtanh.f32 %v603_v19 }
 0xf9f   :  { %v1063_v20 = vpop.eup %1062 }
 0xfa0   :  { %606 = vrot.lane.b32.xlu0 %v1063_v20, %s1111_s7 }
0x1012   :  { %v607_v21 = vpop.permute.xlu0 %606 }
0x1013   :  { %v609_v22 = vmul.f32 %v1061_v16, %v607_v21 }
0x1015   :  { %v612_v23 = vpack.c.bf16 %v609_v22, %v609_v22 }
0x1017   :  { %614 = vrot.lane.b32.xlu1 %v612_v23, %s1112_s3 }
0x1089   :  { %v615_v24 = vpop.permute.xlu1 %614 }
0x108a   :  { %982 = vmatmul.mubr.msk.bf16.vlgmr.msra.gmra.mrb[16].mxu0 %vm171_vm2, %v615_v24 }
0x108b   :  { %997 = vmatprep.mubr.msk.bf16.mxu0 %vm1109_vm1, %v1108_v1  ;;  %994 = vmatpush3.bf16.msra.mxu0 %v1014_v61 }
0x108c   :  { %995 = vmatprep.subr.bf16.mxu0 %v1108_v1 }
0x108f   :  { %996 = vmatpush3.bf16.msra.mxu0 %v1015_v62 }
0x115d   :  { %v653_v26 = vpop.f32.mrb[16].mxu0 }
0x115e   :  { %v659_v27 = vadd.f32 %v653_v26, %v140_v25  ;;  %v983_v28 = vpop.f32.mrb[17].mxu0 }
0x115f   :  { %v656_v29 = vpop.f32.mrb[18].mxu0 }
0x1160   :  { %1064 = vtanh.f32 %v659_v27  ;;  %v984_v30 = vpop.f32.mrb[19].mxu0  ;;  %v880_v32 = vmul.f32 -1.442695, %v659_v27 }
0x1162   :  { %1066 = vpow2.f32 %v880_v32 }
0x116a   :  { %v1065_v31 = vpop.eup %1064 }
0x116b   :  { %669 = vrot.lane.b32.xlu0 %v1065_v31, %s1111_s7 }
0x116c   :  { %v1067_v33 = vpop.eup %1066 }
0x116d   :  { %v663_v34 = vadd.f32 1.0, %v1067_v33 }
0x116f   :  { %1068 = vrcp.f32 %v663_v34 }
0x1179   :  { %v1069_v11 = vpop.eup %1068 }
0x117a   :  { %v667_v55 = vmul.f32 %v1069_v11, %v603_v19 }
0x11dd   :  { %v670_v35 = vpop.permute.xlu0 %669 }
0x11de   :  { %v672_v36 = vmul.f32 %v1069_v11, %v670_v35 }
0x11e0   :  { %674 = vrot.lane.b32.xlu1 %v672_v36, %s1112_s3 }
0x1252   :  { %v675_v37 = vpop.permute.xlu1 %674 }
0x1253   :  { %v677_v38 = vadd.f32 %v675_v37, %v667_v55 }
0x1255   :  { %1070 = vtanh.f32 %v677_v38 }
0x125f   :  { %v1071_v39 = vpop.eup %1070 }
0x1260   :  { %680 = vrot.lane.b32.xlu0 %v1071_v39, %s1111_s7 }
0x12d2   :  { %v681_v40 = vpop.permute.xlu0 %680 }
0x12d3   :  { %v683_v41 = vmul.f32 %v1069_v11, %v681_v40 }
0x12d5   :  { %v686_v42 = vpack.c.bf16 %v683_v41, %v683_v41 }
0x12d7   :  { %688 = vrot.lane.b32.xlu1 %v686_v42, %s1112_s3 }
0x1349   :  { %v689_v43 = vpop.permute.xlu1 %688 }
0x134a   :  { %990 = vmatmul.mubr.msk.bf16.vlgmr.msra.gmra.mrb[16].mxu1 %vm171_vm2, %v689_v43 }
0x141d   :  { %v727_v45 = vpop.f32.mrb[16].mxu1 }
0x141e   :  { %v733_v46 = vadd.f32 %v727_v45, %v143_v44  ;;  %v991_v47 = vpop.f32.mrb[17].mxu1 }
0x141f   :  { %v730_v48 = vpop.f32.mrb[18].mxu1 }
0x1420   :  { %1072 = vtanh.f32 %v733_v46  ;;  %v992_v49 = vpop.f32.mrb[19].mxu1  ;;  %v882_v51 = vmul.f32 -1.442695, %v733_v46 }
0x1422   :  { %1074 = vpow2.f32 %v882_v51 }
0x142a   :  { %v1073_v50 = vpop.eup %1072 }
0x142b   :  { %743 = vrot.lane.b32.xlu0 %v1073_v50, %s1111_s7 }
0x142c   :  { %v1075_v52 = vpop.eup %1074 }
0x142d   :  { %v737_v53 = vadd.f32 1.0, %v1075_v52 }
0x142f   :  { %1076 = vrcp.f32 %v737_v53 }
0x1439   :  { %v1077_v54 = vpop.eup %1076 }
0x143a   :  { %v741_v7 = vmul.f32 %v1077_v54, %v677_v38 }
0x149d   :  { %v744_v56 = vpop.permute.xlu0 %743 }
0x149e   :  { %v746_v59 = vmul.f32 %v1077_v54, %v744_v56 }
0x14a0   :  { %748 = vrot.lane.b32.xlu1 %v746_v59, %s1112_s3 }
0x1512   :  { %v749_v57 = vpop.permute.xlu1 %748 }
0x1513   :  { %v751_v60 = vadd.f32 %v749_v57, %v741_v7 }
0x1515   :  { %1078 = vtanh.f32 %v751_v60 }
0x151f   :  { %v1079_v63 = vpop.eup %1078 }
0x1520   :  { %754 = vrot.lane.b32.xlu0 %v1079_v63, %s1111_s7 }
0x1592   :  { %v755_v0 = vpop.permute.xlu0 %754 }
0x1593   :  { %v757_v3 = vmul.f32 %v1077_v54, %v755_v0 }
0x1595   :  { %v758_v4 = vpack.c.bf16 %v757_v3, %v757_v3 }
0x1597   :  { %771 = vrot.lane.b32.xlu1 %v758_v4, %s1112_s3 }
0x1609   :  { %v772_v6 = vpop.permute.xlu1 %771 }
0x160a   :  { %998 = vmatmul.mubr.msk.bf16.vlgmr.msra.gmra.mrb[20].mxu0 %vm171_vm2, %v772_v6 }
0x16dd   :  { %v822_v13 = vpop.f32.mrb[20].mxu0 }
0x16de   :  { %v823_v1 = vadd.f32 %v883_v12, %v822_v13  ;;  %v999_v14 = vpop.f32.mrb[21].mxu0 }
0x16df   :  { %v825_v2 = vpop.f32.mrb[22].mxu0 }
0x16e0   :  { %v1000_v8 = vpop.f32.mrb[23].mxu0  ;;  %v831_v15 = vsel %vm830_vm3, %v823_v1, -1e+30 }
0x16e1   :  { %832 = vmax.xlane.f32.xlu0 %v831_v15 }
0x176e   :  { %v833_v16 = vpop.xlane.xlu0 %832 }
0x176f   :  { %v834_v17 = vsub.f32 %v831_v15, %v833_v16 }
0x1771   :  { %v835_v5 = vmul.f32 1.442695, %v834_v17 }
0x1773   :  { %1080 = vpow2.f32 %v835_v5 }
0x177d   :  { %v1081_v58 = vpop.eup %1080 }
0x177e   :  { %837 = vadd.xlane.f32.xlu1 %v1081_v58 }
0x180b   :  { %v838_v18 = vpop.xlane.xlu1 %837 }
0x180c   :  { %1082 = vrcp.f32 %v838_v18 }
0x1816   :  { %v1083_v19 = vpop.eup %1082 }
0x1817   :  { %v840_v20 = vmul.f32 %v1083_v19, %v1081_v58 }
0x1819   :  { %841 = vst [vmem:[#allocation3] sm:$0xff] %v840_v20 }
0x181a   :  { %1095 = shalt.err (!%p1092_p4)
}
0x181b   :  { %s1096_s20 = scalar_lea.hbm %s1328_s6, 128 }
0x181c   :  { %p1097_p5 = scmp.ne.s32.totalorder %s1328_s6, %s1096_s20  ;;  %p1100_p6 = scmp.lt.u32.totalorder %s1096_s20, %s1328_s6 }
0x181e   :  { %p1102_p7 = pnand %p1100_p6, %p1097_p5 }
0x1820   :  { %1105 = shalt.err (!%p1102_p7)
}
0x1821   :  { %851 = dma.vmem_to_hbm [thread:$0]  %s849_s17, 128, %s1328_s6, [#allocation4]  }
0x1822   :  { %1106 = dma.done.wait [#allocation4], 128  }
0x1823   :  { %1107 = vsyncadd [#allocation4], 4294967168 }
0x1824   :  { %855 = vsyncpa [#allocation4], 1 }

</bundles_post_ra>
